<compile_context>
chip_gen: v7x
topology: tpu7x:2x2x1
jax: 0.10.0
libtpu: 0.0.40
codegen_flags: <defaults>
</compile_context>

<pallas_src>
import math
import functools

import jax
import jax.numpy as jnp
from jax.experimental import pallas as pl
from jax.experimental.pallas import tpu as pltpu


def _round_up(a, b):
    return ((a + b - 1) // b) * b


# ---------------------------------------------------------------------------
# DFT weight construction (mirrors STFT.__init__; hann window is analytic)
# ---------------------------------------------------------------------------
def _make_dft_weights(n_fft, win_length, rows_pad, dtype, k_rows=None):
    k_rows = n_fft if k_rows is None else k_rows
    rows = 1 + n_fft // 2
    # periodic hann (librosa get_window('hann', win_length, fftbins=True))
    win = 0.5 - 0.5 * jnp.cos(
        2.0 * math.pi * jnp.arange(win_length, dtype=jnp.float32) / win_length)
    if win_length < n_fft:
        lpad = (n_fft - win_length) // 2
        win = jnp.pad(win, (lpad, n_fft - win_length - lpad))
    elif win_length > n_fft:
        raise ValueError("win_length must be <= n_fft")
    k = jnp.arange(n_fft, dtype=jnp.int32)[:, None]        # time index
    r = jnp.arange(rows, dtype=jnp.int32)[None, :]          # frequency index
    # exact integer phase reduction -> no fp32 angle blow-up for large n_fft
    phase = (k * r) % n_fft
    ang = phase.astype(jnp.float32) * (2.0 * math.pi / n_fft)
    # conv_real.weight[r, 0, k] =  cos(ang) * win[k]
    # conv_imag.weight[r, 0, k] = -sin(ang) * win[k]
    wr = jnp.cos(ang) * win[:, None]                         # (n_fft, rows)
    wi = -jnp.sin(ang) * win[:, None]
    # pad frequency axis to a lane multiple and (optionally) the K axis;
    # padded entries are zero so they contribute nothing.
    wr = jnp.pad(wr, ((0, k_rows - n_fft), (0, rows_pad - rows)))
    wi = jnp.pad(wi, ((0, k_rows - n_fft), (0, rows_pad - rows)))
    return jnp.concatenate([wr, wi], axis=1).astype(dtype)   # (k_rows, 2*rows_pad)


def _power_epilogue(real, imag, power):
    p = real * real + imag * imag
    if power == 2.0:
        return p
    if power == 1.0:
        return jnp.sqrt(p)
    return p ** (power / 2.0)


# ---------------------------------------------------------------------------
# Fused-framing kernel: rebuild the frame tile from hop-chunks in VMEM and
# accumulate `ratio` partial matmuls against sub-blocks of the DFT weight.
# ---------------------------------------------------------------------------
def _fused_kernel(chunks_ref, halo_ref, w_ref, out_ref, cbuf_ref, *,
                  tf, hop, ratio, rows_pad, power, compute_dtype):
    # chunks_ref: (1, tf, hop)   hop-chunks covering the first tf frames' starts
    # halo_ref  : (1, 1, ratio-1, hop)  the ratio-1 chunks past the tile
    # w_ref     : (n_fft, 2*rows_pad)   resident concatenated real|imag weight
    # out_ref   : (1, tf, rows_pad)
    # cbuf_ref  : (tf + ratio - 1, hop) f32 scratch
    cbuf_ref[0:tf, :] = chunks_ref[0].astype(jnp.float32)
    cbuf_ref[tf:tf + ratio - 1, :] = halo_ref[0, 0].astype(jnp.float32)
    acc = None
    for c in range(ratio):
        lhs = cbuf_ref[c:c + tf, :].astype(compute_dtype)        # (tf, hop)
        part = jnp.dot(lhs, w_ref[c * hop:(c + 1) * hop, :],
                       preferred_element_type=jnp.float32)       # (tf, 2*rows_pad)
        acc = part if acc is None else acc + part
    real = acc[:, :rows_pad]                                     # lane-aligned split
    imag = acc[:, rows_pad:]
    out_ref[0] = _power_epilogue(real, imag, power).astype(out_ref.dtype)


# ---------------------------------------------------------------------------
# Fallback kernel (hop does not divide n_fft, or hop == n_fft): frames are
# materialized in the wrapper and consumed as a plain (tm, Kp) tile.
# ---------------------------------------------------------------------------
def _frames_kernel(frames_ref, w_ref, out_ref, *, rows_pad, power):
    y = jnp.dot(frames_ref[...], w_ref[...], preferred_element_type=jnp.float32)
    real = y[:, :rows_pad]
    imag = y[:, rows_pad:]
    out_ref[...] = _power_epilogue(real, imag, power).astype(out_ref.dtype)


# ---------------------------------------------------------------------------
# Wrapper
# ---------------------------------------------------------------------------
def spectrogram(x, *, n_fft=128, hop_length=None, win_length=None,
                center=True, pad_mode="reflect", power=2.0,
                frame_tile=None, compute_dtype=jnp.bfloat16):
    win_length = n_fft if win_length is None else win_length
    hop_length = int(win_length // 4) if hop_length is None else int(hop_length)
    rows = 1 + n_fft // 2
    rows_pad = _round_up(rows, 128)
    itm = jnp.dtype(compute_dtype).itemsize

    x = x.astype(jnp.float32)
    B = x.shape[0]
    if center:
        x = jnp.pad(x, ((0, 0), (n_fft // 2, n_fft // 2)), mode=pad_mode)
    Lp = x.shape[1]
    F = (Lp - n_fft) // hop_length + 1
    if F <= 0:
        raise ValueError("signal too short for a single frame")

    if frame_tile is None:
        frame_tile = 1024 if n_fft <= 512 else (512 if n_fft <= 1024 else 256)
    w_bytes = n_fft * 2 * rows_pad * itm
    VMEM_BUDGET = 24 * 1024 * 1024

    fused = (n_fft % hop_length == 0) and (hop_length < n_fft)

    if fused:
        hop = hop_length
        ratio = n_fft // hop

        # Frame-tile: big for per-step-overhead amortization, but keep >= ~4
        # total grid steps when F allows (2 steps per v7x TensorCore so the
        # pipeline still overlaps after the megacore split).
        min_tiles = max(1, -(-4 // B))                     # ceil(4 / B)
        tf = max(8, min(_round_up(frame_tile, 8),
                        _round_up(-(-F // min_tiles), 8)))

        def need_bytes(t):
            return (2 * t * hop * itm                      # chunk tile (x2 bufs)
                    + 2 * (ratio - 1) * hop * itm          # halo tile  (x2 bufs)
                    + 2 * w_bytes                          # resident weight (x2)
                    + 2 * t * rows_pad * 4                 # out tile   (x2 bufs)
                    + (t + ratio) * hop * 4                # f32 scratch cbuf
                    + 3 * t * rows_pad * 4)                # acc + epilogue temps

        while tf > 8 and need_bytes(tf) > VMEM_BUDGET:
            tf = max(8, _round_up(tf // 2, 8))
        # TODO(synk): for very large n_fft (>= 4096) the resident weight alone
        # exceeds VMEM; tile the 2*rows_pad (N) axis and/or single-buffer the
        # weight (pl.Buffered(1)) in that regime.
        vmem_limit = int(min(max(2 * need_bytes(tf), 32 * 1024 * 1024),
                             48 * 1024 * 1024))

        F_pad = _round_up(F, tf)
        F_tiles = F_pad // tf
        n_chunks_ext = F_pad + ratio - 1

        # hop-chunked padded signal (free reshape; only zero-pads the tail).
        need_samples = (F + ratio - 1) * hop               # == (F-1)*hop + n_fft <= Lp
        sig = x[:, :need_samples]
        extra = n_chunks_ext * hop - need_samples
        if extra:
            sig = jnp.pad(sig, ((0, 0), (0, extra)))
        chunks = sig.reshape(B, n_chunks_ext, hop).astype(compute_dtype)

        # per-tile halo: the ratio-1 chunks immediately after each tile
        hidx = (tf * (1 + jnp.arange(F_tiles, dtype=jnp.int32))[:, None]
                + jnp.arange(ratio - 1, dtype=jnp.int32)[None, :])
        halo = chunks[:, hidx, :]                          # (B, F_tiles, ratio-1, hop)

        w = _make_dft_weights(n_fft, win_length, rows_pad, compute_dtype)

        cost = pl.CostEstimate(
            flops=int(2 * B * F_pad * n_fft * (2 * rows_pad)
                      + 3 * B * F_pad * rows_pad),
            transcendentals=0 if power == 2.0 else int(B * F_pad * rows_pad),
            bytes_accessed=int(itm * (B * n_chunks_ext * hop
                                      + B * F_tiles * (ratio - 1) * hop
                                      + n_fft * 2 * rows_pad)
                               + 4 * B * F_pad * rows_pad))

        kernel = functools.partial(
            _fused_kernel, tf=tf, hop=hop, ratio=ratio,
            rows_pad=rows_pad, power=power, compute_dtype=compute_dtype)

        out = pl.pallas_call(
            kernel,
            out_shape=jax.ShapeDtypeStruct((B, F_pad, rows_pad), jnp.float32),
            grid=(B, F_tiles),
            in_specs=[
                pl.BlockSpec((1, tf, hop), lambda b, j: (b, j, 0)),
                pl.BlockSpec((1, 1, ratio - 1, hop), lambda b, j: (b, j, 0, 0)),
                pl.BlockSpec((n_fft, 2 * rows_pad), lambda b, j: (0, 0)),
            ],
            out_specs=pl.BlockSpec((1, tf, rows_pad), lambda b, j: (b, j, 0)),
            scratch_shapes=[pltpu.VMEM((tf + ratio - 1, hop), jnp.float32)],
            compiler_params=pltpu.CompilerParams(
                dimension_semantics=("parallel", "parallel"),
                vmem_limit_bytes=vmem_limit),
            cost_estimate=cost,
        )(chunks, halo, w)

        # TODO(synk): let downstream consumers read the (F_pad, rows_pad)
        # lane-dense layout directly to eliminate this final slice pass.
        out = out[:, :F, :rows]                            # (B, F, rows)
        return out[:, None, :, :]                          # (B, 1, F, rows)

    # ----- fallback: hop does not divide n_fft, or hop == n_fft -------------
    Kp = _round_up(n_fft, 128)                             # lane-dense K axis
    if Kp > n_fft:
        x = jnp.pad(x, ((0, 0), (0, Kp - n_fft)))          # keep gather in-bounds
        # (weight rows >= n_fft are zero, so the extra gathered samples are inert)
    if hop_length == n_fft and Kp == n_fft:
        frames = x[:, :F * n_fft].reshape(B, F, n_fft)     # free framing
    else:
        # TODO(synk): fuse this gather-based framing into the kernel (manual
        # DMA of per-frame windows) for hop lengths that do not divide n_fft.
        idx = (jnp.arange(F, dtype=jnp.int32)[:, None] * hop_length
               + jnp.arange(Kp, dtype=jnp.int32)[None, :])
        frames = x[:, idx]
    M = B * F
    frames = frames.reshape(M, Kp)

    tm = max(8, min(_round_up(frame_tile, 8), _round_up(-(-M // 4), 8)))

    def need_bytes_fb(t):
        return (2 * t * Kp * itm + 2 * Kp * 2 * rows_pad * itm
                + 2 * t * rows_pad * 4 + 3 * t * rows_pad * 4)

    while tm > 8 and need_bytes_fb(tm) > VMEM_BUDGET:
        tm = max(8, _round_up(tm // 2, 8))
    vmem_limit = int(min(max(2 * need_bytes_fb(tm), 32 * 1024 * 1024),
                         48 * 1024 * 1024))

    M_pad = _round_up(M, tm)
    if M_pad != M:
        frames = jnp.pad(frames, ((0, M_pad - M), (0, 0)))
    frames = frames.astype(compute_dtype)
    w = _make_dft_weights(n_fft, win_length, rows_pad, compute_dtype, k_rows=Kp)

    cost = pl.CostEstimate(
        flops=int(2 * M_pad * Kp * (2 * rows_pad) + 3 * M_pad * rows_pad),
        transcendentals=0 if power == 2.0 else int(M_pad * rows_pad),
        bytes_accessed=int(itm * (M_pad * Kp + Kp * 2 * rows_pad)
                           + 4 * M_pad * rows_pad))

    kernel = functools.partial(_frames_kernel, rows_pad=rows_pad, power=power)
    out = pl.pallas_call(
        kernel,
        out_shape=jax.ShapeDtypeStruct((M_pad, rows_pad), jnp.float32),
        grid=(M_pad // tm,),
        in_specs=[
            pl.BlockSpec((tm, Kp), lambda i: (i, 0)),
            pl.BlockSpec((Kp, 2 * rows_pad), lambda i: (0, 0)),
        ],
        out_specs=pl.BlockSpec((tm, rows_pad), lambda i: (i, 0)),
        compiler_params=pltpu.CompilerParams(
            dimension_semantics=("parallel",),
            vmem_limit_bytes=vmem_limit),
        cost_estimate=cost,
    )(frames, w)

    out = out[:M, :rows].reshape(B, F, rows)
    return out[:, None, :, :]


# ---------------------------------------------------------------------------
# Pure-JAX reference (same math, no Pallas)
# ---------------------------------------------------------------------------
def _reference(x, *, n_fft=128, hop_length=None, win_length=None,
               center=True, pad_mode="reflect", power=2.0):
    win_length = n_fft if win_length is None else win_length
    hop_length = int(win_length // 4) if hop_length is None else int(hop_length)
    rows = 1 + n_fft // 2
    rows_pad = _round_up(rows, 128)
    x = x.astype(jnp.float32)
    if center:
        x = jnp.pad(x, ((0, 0), (n_fft // 2, n_fft // 2)), mode=pad_mode)
    B, Lp = x.shape
    F = (Lp - n_fft) // hop_length + 1
    idx = (jnp.arange(F)[:, None] * hop_length + jnp.arange(n_fft)[None, :])
    frames = x[:, idx]
    w = _make_dft_weights(n_fft, win_length, rows_pad, jnp.float32)
    wr = w[:, :rows]
    wi = w[:, rows_pad:rows_pad + rows]
    real = jnp.einsum("bfk,kr->bfr", frames, wr, precision="highest")
    imag = jnp.einsum("bfk,kr->bfr", frames, wi, precision="highest")
    p = real ** 2 + imag ** 2
    if power == 1.0:
        p = jnp.sqrt(p)
    elif power != 2.0:
        p = p ** (power / 2.0)
    return p[:, None, :, :]


if __name__ == "__main__":
    # Small shapes consistent with the module: n_fft=128 -> rows=65, hop=32.
    B, L, N_FFT = 2, 256, 128
    key = jax.random.PRNGKey(0)
    x = jax.random.normal(key, (B, L), dtype=jnp.float32)
    rows = 1 + N_FFT // 2

    # 1) fused-framing path (hop = n_fft//4), fp32 compute: tight check.
    out = jax.block_until_ready(
        spectrogram(x, n_fft=N_FFT, compute_dtype=jnp.float32))
    ref = _reference(x, n_fft=N_FFT)
    F = L // (N_FFT // 4) + 1
    assert out.shape == (B, 1, F, rows), out.shape
    rel = float(jnp.max(jnp.abs(out - ref))) / (float(jnp.max(jnp.abs(ref))) + 1e-12)
    assert rel < 3e-5, f"fused fp32 mismatch: rel {rel}"

    # 2) fused-framing path, default bf16 compute: loose check.
    out_bf = jax.block_until_ready(spectrogram(x, n_fft=N_FFT))
    assert out_bf.shape == (B, 1, F, rows), out_bf.shape
    rel_bf = float(jnp.max(jnp.abs(out_bf - ref))) / (float(jnp.max(jnp.abs(ref))) + 1e-12)
    assert rel_bf < 2.5e-2, f"fused bf16 mismatch: rel {rel_bf}"

    # 3) fallback gather path (win_length=96 -> hop=24 does not divide n_fft),
    #    power=1.0 (sqrt epilogue), fp32: tight check.
    out1 = jax.block_until_ready(
        spectrogram(x, n_fft=N_FFT, win_length=96, power=1.0,
                    compute_dtype=jnp.float32))
    ref1 = _reference(x, n_fft=N_FFT, win_length=96, power=1.0)
    assert out1.shape == ref1.shape, (out1.shape, ref1.shape)
    rel1 = float(jnp.max(jnp.abs(out1 - ref1))) / (float(jnp.max(jnp.abs(ref1))) + 1e-12)
    assert rel1 < 3e-5, f"fallback fp32 mismatch: rel {rel1}"

    # 4) fallback reshape path (hop == n_fft), fp32.
    out2 = jax.block_until_ready(
        spectrogram(x, n_fft=N_FFT, hop_length=N_FFT, compute_dtype=jnp.float32))
    ref2 = _reference(x, n_fft=N_FFT, hop_length=N_FFT)
    assert out2.shape == ref2.shape, (out2.shape, ref2.shape)
    rel2 = float(jnp.max(jnp.abs(out2 - ref2))) / (float(jnp.max(jnp.abs(ref2))) + 1e-12)
    assert rel2 < 3e-5, f"hop==n_fft fp32 mismatch: rel {rel2}"

    print("KERNEL_OK")
</pallas_src>

<mosaic_0001>
module attributes {stable_mosaic.version = 11 : i64} {
  func.func @_fused_kernel(%arg0: i32, %arg1: i32, %arg2: memref<1x8x32xf32, #tpu.memory_space<vmem>>, %arg3: memref<1x1x3x32xf32, #tpu.memory_space<vmem>>, %arg4: memref<128x256xf32, #tpu.memory_space<vmem>>, %arg5: memref<1x8x128xf32, #tpu.memory_space<vmem>>, %arg6: memref<11x32xf32, #tpu.memory_space<vmem>>) attributes {dimension_semantics = [#tpu.dimension_semantics<parallel>, #tpu.dimension_semantics<parallel>], iteration_bounds = array<i64: 2, 2>, scalar_prefetch = 0 : i64, scratch_operands = 1 : i64, tpu.core_type = #tpu.core_type<tc>, window_params = [{transform_indices = @transform_0, window_bounds = array<i64: 1, 8, 32>}, {transform_indices = @transform_1, window_bounds = array<i64: 1, 1, 3, 32>}, {pipeline_mode = #tpu.pipeline_mode<synchronous>, transform_indices = @transform_2, window_bounds = array<i64: 128, 256>}, {transform_indices = @transform_3, window_bounds = array<i64: 1, 8, 128>}]} {
    %c0 = arith.constant 0 : index
    %c0_0 = arith.constant 0 : index
    %c0_1 = arith.constant 0 : index
    %0 = vector.load %arg2[%c0, %c0_0, %c0_1] : memref<1x8x32xf32, #tpu.memory_space<vmem>>, vector<1x8x32xf32>
    %1 = vector.shape_cast %0 : vector<1x8x32xf32> to vector<8x32xf32>
    %c0_2 = arith.constant 0 : index
    %c0_3 = arith.constant 0 : index
    %2 = vector.load %arg6[%c0_2, %c0_3] : memref<11x32xf32, #tpu.memory_space<vmem>>, vector<8x32xf32>
    tpu.vector_store %arg6[%c0_2, %c0_3], %1 {strides = array<i32>} : memref<11x32xf32, #tpu.memory_space<vmem>>, vector<8x32xf32>,
    %c0_4 = arith.constant 0 : index
    %c0_5 = arith.constant 0 : index
    %c0_6 = arith.constant 0 : index
    %c0_7 = arith.constant 0 : index
    %3 = vector.load %arg3[%c0_4, %c0_5, %c0_6, %c0_7] : memref<1x1x3x32xf32, #tpu.memory_space<vmem>>, vector<1x1x3x32xf32>
    %4 = vector.shape_cast %3 : vector<1x1x3x32xf32> to vector<3x32xf32>
    %c8 = arith.constant 8 : index
    %c0_8 = arith.constant 0 : index
    %5 = vector.load %arg6[%c8, %c0_8] : memref<11x32xf32, #tpu.memory_space<vmem>>, vector<3x32xf32>
    tpu.vector_store %arg6[%c8, %c0_8], %4 {strides = array<i32>} : memref<11x32xf32, #tpu.memory_space<vmem>>, vector<3x32xf32>,
    %c0_9 = arith.constant 0 : index
    %c0_10 = arith.constant 0 : index
    %6 = vector.load %arg6[%c0_9, %c0_10] : memref<11x32xf32, #tpu.memory_space<vmem>>, vector<8x32xf32>
    %c0_11 = arith.constant 0 : index
    %c0_12 = arith.constant 0 : index
    %7 = vector.load %arg4[%c0_11, %c0_12] : memref<128x256xf32, #tpu.memory_space<vmem>>, vector<32x256xf32>
    %cst = arith.constant dense<0.000000e+00> : vector<8x256xf32>
    %8 = tpu.matmul %6, %7, %cst {dimension_numbers = #tpu.dot_dimension_numbers<[1], [0], [0], [1], [0, 0, 1, 1], [], []>} : vector<8x32xf32>, vector<32x256xf32>, vector<8x256xf32> -> vector<8x256xf32>
    %c1 = arith.constant 1 : index
    %c0_13 = arith.constant 0 : index
    %9 = vector.load %arg6[%c1, %c0_13] : memref<11x32xf32, #tpu.memory_space<vmem>>, vector<8x32xf32>
    %c32 = arith.constant 32 : index
    %c0_14 = arith.constant 0 : index
    %10 = vector.load %arg4[%c32, %c0_14] : memref<128x256xf32, #tpu.memory_space<vmem>>, vector<32x256xf32>
    %cst_15 = arith.constant dense<0.000000e+00> : vector<8x256xf32>
    %11 = tpu.matmul %9, %10, %cst_15 {dimension_numbers = #tpu.dot_dimension_numbers<[1], [0], [0], [1], [0, 0, 1, 1], [], []>} : vector<8x32xf32>, vector<32x256xf32>, vector<8x256xf32> -> vector<8x256xf32>
    %12 = arith.addf %8, %11 : vector<8x256xf32>
    %c2 = arith.constant 2 : index
    %c0_16 = arith.constant 0 : index
    %13 = vector.load %arg6[%c2, %c0_16] : memref<11x32xf32, #tpu.memory_space<vmem>>, vector<8x32xf32>
    %c64 = arith.constant 64 : index
    %c0_17 = arith.constant 0 : index
    %14 = vector.load %arg4[%c64, %c0_17] : memref<128x256xf32, #tpu.memory_space<vmem>>, vector<32x256xf32>
    %cst_18 = arith.constant dense<0.000000e+00> : vector<8x256xf32>
    %15 = tpu.matmul %13, %14, %cst_18 {dimension_numbers = #tpu.dot_dimension_numbers<[1], [0], [0], [1], [0, 0, 1, 1], [], []>} : vector<8x32xf32>, vector<32x256xf32>, vector<8x256xf32> -> vector<8x256xf32>
    %16 = arith.addf %12, %15 : vector<8x256xf32>
    %c3 = arith.constant 3 : index
    %c0_19 = arith.constant 0 : index
    %17 = vector.load %arg6[%c3, %c0_19] : memref<11x32xf32, #tpu.memory_space<vmem>>, vector<8x32xf32>
    %c96 = arith.constant 96 : index
    %c0_20 = arith.constant 0 : index
    %18 = vector.load %arg4[%c96, %c0_20] : memref<128x256xf32, #tpu.memory_space<vmem>>, vector<32x256xf32>
    %cst_21 = arith.constant dense<0.000000e+00> : vector<8x256xf32>
    %19 = tpu.matmul %17, %18, %cst_21 {dimension_numbers = #tpu.dot_dimension_numbers<[1], [0], [0], [1], [0, 0, 1, 1], [], []>} : vector<8x32xf32>, vector<32x256xf32>, vector<8x256xf32> -> vector<8x256xf32>
    %20 = arith.addf %16, %19 : vector<8x256xf32>
    %21 = vector.extract_strided_slice %20 {offsets = [0, 0], sizes = [8, 128], strides = [1, 1]} : vector<8x256xf32> to vector<8x128xf32>
    %22 = vector.extract_strided_slice %20 {offsets = [0, 128], sizes = [8, 128], strides = [1, 1]} : vector<8x256xf32> to vector<8x128xf32>
    %23 = arith.mulf %21, %21 : vector<8x128xf32>
    %24 = arith.mulf %22, %22 : vector<8x128xf32>
    %25 = arith.addf %23, %24 : vector<8x128xf32>
    %c0_22 = arith.constant 0 : index
    %c0_23 = arith.constant 0 : index
    %c0_24 = arith.constant 0 : index
    %26 = vector.load %arg5[%c0_22, %c0_23, %c0_24] : memref<1x8x128xf32, #tpu.memory_space<vmem>>, vector<1x8x128xf32>
    %27 = vector.shape_cast %26 : vector<1x8x128xf32> to vector<8x128xf32>
    %28 = vector.shape_cast %25 : vector<8x128xf32> to vector<1x8x128xf32>
    tpu.vector_store %arg5[%c0_22, %c0_23, %c0_24], %28 {strides = array<i32>} : memref<1x8x128xf32, #tpu.memory_space<vmem>>, vector<1x8x128xf32>,
    return
  }
  func.func @transform_0(%arg0: i32, %arg1: i32) -> (i32, i32, i32) {
    %c0_i32 = arith.constant 0 : i32
    %c0_i32_0 = arith.constant 0 : i32
    return %arg0, %arg1, %c0_i32 : i32, i32, i32
  }
  func.func @transform_1(%arg0: i32, %arg1: i32) -> (i32, i32, i32, i32) {
    %c0_i32 = arith.constant 0 : i32
    %c0_i32_0 = arith.constant 0 : i32
    %c0_i32_1 = arith.constant 0 : i32
    return %arg0, %arg1, %c0_i32, %c0_i32_0 : i32, i32, i32, i32
  }
  func.func @transform_2(%arg0: i32, %arg1: i32) -> (i32, i32) {
    %c0_i32 = arith.constant 0 : i32
    %c0_i32_0 = arith.constant 0 : i32
    %c0_i32_1 = arith.constant 0 : i32
    return %c0_i32, %c0_i32_0 : i32, i32
  }
  func.func @transform_3(%arg0: i32, %arg1: i32) -> (i32, i32, i32) {
    %c0_i32 = arith.constant 0 : i32
    %c0_i32_0 = arith.constant 0 : i32
    return %arg0, %arg1, %c0_i32 : i32, i32, i32
  }
}

</mosaic_0001>

<bundles_post_ra>
// kernel: tpu_custom_call.1
= control target key start
LH: loop header
LB: loop body
LE: loop exit
PB: predicated region body
PF: predicated region fallthrough
CT: control target
= control target key end

     0   :  { %8 = vsyncpa [#allocation4], 0  ;;  %s1197_s0 = inlined_call_operand.vmem [shape: f32[2,19,32], index: 0, kind: input, shape index: {}]   ;;  %s1198_s1 = inlined_call_operand.vmem [shape: f32[2,2,3,32], index: 1, kind: input, shape index: {}]   ;;  %s1199_s2 = inlined_call_operand.hbm [shape: f32[128,256], index: 2, kind: input, shape index: {}]   ;;  %s1200_s3 = inlined_call_operand.hbm [shape: f32[2,16,128], index: 3, kind: output, shape index: {}]  }
   0x1   :  { %9 = vsyncpa [#allocation5], 0 }
   0x2   :  { %11 = vsyncpa [#allocation5 + $0x1], 0  ;;  %s1007_s12 = smov 0   ;;  %s1009_s13 = smov 0  }
   0x3   :  { %s1011_s14 = smov 0   ;;  %s1013_s15 = smov 0  }
   0x4   :  { %s1015_s16 = smov 0   ;;  %s1017_s17 = smov 0  }
   0x5   :  { %s1019_s18 = smov 0   ;;  %s1021_s19 = smov 0  }
   0x6 LB: > { %s710_s20 = sadd.s32 4294967295, %s980_s19   ;;  %s711_s21 = sadd.s32 4294967294, %s980_s19   ;;  %s980_s19 = sphi %s1021_s19, %s17_s19   ;;  %s976_s18 = sphi %s1019_s18, %s1220_s18   ;;  %s972_s17 = sphi %s1017_s17, %s1219_s17   ;;  %s968_s16 = sphi %s1015_s16, %s1218_s16   ;;  %s964_s15 = sphi %s1013_s15, %s1217_s15   ;;  %s960_s14 = sphi %s1011_s14, %s1216_s14   ;;  %s956_s13 = sphi %s1009_s13, %s1215_s13   ;;  %s952_s12 = sphi %s1007_s12, %s1214_s12  }
   0x7   : > { %s26_s22 = sadd.s32 1, %s972_s17  ;;  %s29_s23 = sadd.s32 1, %s976_s18 }
   0x8   : > { %p27_p0 = scmp.ge.s32.totalorder %s26_s22, 2  ;;  %s115_s24 = sadd.s32 1, %s960_s14 }
   0x9   : > { %p125_p1 = scmp.ne.s32.totalorder %s960_s14, %s956_s13  ;;  %p126_p2 = scmp.eq.s32.totalorder %s710_s20, 3 }
   0xa   : > { %s1222_s22 = smov (%p27_p0, %s26_s22), 0  ;;  %s1224_s23 = smov (!%p27_p0, %s29_s23), %s976_s18 }
   0xb   : > { %s111_s25 = ssub.s32 %s972_s17, %s1222_s22  ;;  %p1059_p3 = por %p126_p2, %p125_p1 }
   0xc   : > { %p31_p4 = scmp.ge.s32.totalorder %s1224_s23, 2  ;;  %p131_p5 = scmp.ne.s32.totalorder %s956_s13, %s952_s12 }
   0xd   : > { %s1205_s26 = scalar_select %p1059_p3, 1, 0 }
   0xe   : > { %p132_p6 = scmp.eq.s32.totalorder %s711_s21, 3  ;;  %p712_p7 = scmp.ge.s32.totalorder %s980_s19, 1 }
   0xf   : > { %s1226_s23 = smov (%p31_p4, %s1224_s23), 0  ;;  %p139_p9 = scmp.lt.s32.totalorder %s980_s19, 5 }
  0x10   : > { %p1068_p8 = por %p132_p6, %p131_p5  ;;  %s110_s28 = ssub.s32 %s976_s18, %s1226_s23 }
  0x11   : > { %s112_s29 = sor.u32 %s111_s25, %s110_s28  ;;  %p1075_p10 = pnand %p712_p7, %p139_p9 }
  0x12   : > { %s1206_s27 = scalar_select %p1068_p8, 1, 0 }
  0x13   : > { %s1207_s30 = scalar_select %p1075_p10, 1, 0 }
  0x14   : > { %p113_p11 = scmp.eq.s32.totalorder %s112_s29, 0  ;;  %p1079_p12 = scmp.eq.s32.totalorder %s710_s20, 0 }
  0x15   : > { %p775_p13 = pneg %p1075_p10  ;;  %s982_s6 = smov [#allocation3]  }
  0x16   : > { %s1208_s4 = scalar_select %p1079_p12, 1, 0 }
  0x17   : > { %s1086_s5 = scalar_select %p113_p11, %s960_s14, %s115_s24  }
  0x18   : > { %s151_s7 = sshll.u32 %s982_s6, 4  ;;  %p1090_p0 = pnand %p1079_p12, %p775_p13  ;;  %s152_s7 = int_to_ptr.vmem [resolvable:$true] %s151_s7 }
  0x19   : > { %s854_s11 = scalar_lea.hbm %s1199_s2, 4096 }
  0x1a   : > { %p855_p1 = scmp.ne.s32.totalorder %s1199_s2, %s854_s11  ;;  %p856_p2 = pneg %p1090_p0 }
  0x1b   : > { %p861_p6 = scmp.lt.u32.totalorder %s854_s11, %s1199_s2 }
  0x1c   : > { %p857_p4 = pnand %p856_p2, %p855_p1 }
  0x1e   : > { %p858_p5 = pneg %p857_p4 }
  0x20   : > { %p863_p7 = pnand %p861_p6, %p858_p5 }
  0x22   : > { %866 = shalt.err (!%p863_p7)
}
  0x23   : > { %s867_s28 = scalar_lea.vmem %s152_s7, 4096  ;;  %p875_p8 = scmp.lt.s32.totalorder %s152_s7, %s152_s7 }
  0x24   : > { %p868_p9 = scmp.ne.s32.totalorder %s152_s7, %s867_s28  ;;  %p876_p3 = scmp.lt.s32.totalorder %s867_s28, %s867_s28 }
  0x26   : > { %p870_p11 = pnand %p868_p9, %p856_p2  ;;  %p877_p12 = por %p876_p3, %p875_p8 }
  0x28   : > { %p871_p13 = pneg %p870_p11 }
  0x2a   : > { %p878_p10 = pnand %p877_p12, %p871_p13 }
  0x2c   : > { %881 = shalt.err (!%p878_p10)
}
  0x2d   : > { %s983_s29 = smov 256   ;;  %s984_s6 = smov 16  }
  0x2e   : > { %778 = dma.hbm_to_vmem [thread:$0]  (!%p1090_p0), %s1199_s2, 4096, %s152_s7, [#allocation4], %s983_s29, %s983_s29, %s984_s6  }
  0x2f   : > { %p1210_p1 = scmp.ne.s32.totalorder %s1207_s30, 0 }
  0x30   : > { %p1211_p4 = scmp.ne.s32.totalorder (!%p1210_p1), %s1208_s4, 0 }
  0x31   : > { %189 = sbr.rel (%p1210_p1) target bundleno = 318 (0x13e), region = 32 }
  0x38   : > { %943 = dma.done.wait (%p1211_p4), [#allocation4], 4096  }
  0x39   : > { %945 = vsyncadd (%p1211_p4), [#allocation4], 4294963200  ;;  %p224_p3 = scmp.lt.s32.totalorder %s968_s16, 1  ;;  %p226_p8 = scmp.lt.s32.totalorder %s964_s15, 2  ;;  %v985_v0 = vmov 0.0   ;;  %v257_v1 = vld [vmem:[#allocation3 + $0x48] sm:$0xff] }
  0x3a   : > { %331 = vmatprep.mubr.f32.mxu1 %v985_v0  ;;  %488 = vmatprep.mubr.f32.mxu0 %v985_v0  ;;  %p234_p10 = scmp.lt.s32.totalorder %s964_s15, 1  ;;  %v259_v2 = vld [vmem:[#allocation3 + $0x58] sm:$0xff]  ;;  %v414_v3 = vld [vmem:[#allocation3 + $0x88] sm:$0xff]  ;;  %v256_v6 = vld [vmem:[#allocation3 + $0x40] sm:$0xff]  ;;  %vm241_vm0 = vcmask 261120   ;;  %vm244_vm1 = vcmask 256000  }
  0x3b   : > { %s225_s30 = scalar_select %p224_p3, %s968_s16, 1  ;;  %v730_v4 = vpack.c.bf16 %v259_v2, %v257_v1  ;;  %v416_v5 = vld [vmem:[#allocation3 + $0x98] sm:$0xff]  ;;  %v258_v7 = vld [vmem:[#allocation3 + $0x50] sm:$0xff]  ;;  %v413_v10 = vld [vmem:[#allocation3 + $0x80] sm:$0xff] }
  0x3c   : > { %s227_s7 = scalar_select %p226_p8, %s964_s15, 2  ;;  %v746_v8 = vpack.c.bf16 %v416_v5, %v414_v3  ;;  %v732_v9 = vpack.c.bf16 %v258_v7, %v256_v6  ;;  %v415_v11 = vld [vmem:[#allocation3 + $0x90] sm:$0xff]  ;;  %v261_v12 = vld [vmem:[#allocation3 + $0x68] sm:$0xff]  ;;  %v263_v14 = vld [vmem:[#allocation3 + $0x78] sm:$0xff] }
  0x3d   : > { %s768_s8 = smul.u32 3, %s225_s30  ;;  %s719_s11 = sshll.u32 %s225_s30, 1  ;;  %731 = vmatprep.subr.bf16.mxu1 %v730_v4  ;;  %v748_v13 = vpack.c.bf16 %v415_v11, %v413_v10  ;;  %v418_v15 = vld [vmem:[#allocation3 + $0xa8] sm:$0xff]  ;;  %v420_v16 = vld [vmem:[#allocation3 + $0xb8] sm:$0xff]  ;;  %v734_v17 = vpack.c.bf16 %v263_v14, %v261_v12  ;;  %v260_v19 = vld [vmem:[#allocation3 + $0x60] sm:$0xff] }
  0x3e   : > { %s235_s4 = scalar_select %p234_p10, %s964_s15, 1  ;;  %747 = vmatprep.subr.bf16.mxu0 %v746_v8  ;;  %733 = vmatpush1.bf16.msra.mxu1 %v732_v9  ;;  %v750_v18 = vpack.c.bf16 %v420_v16, %v418_v15  ;;  %v262_v20 = vld [vmem:[#allocation3 + $0x70] sm:$0xff]  ;;  %v417_v21 = vld [vmem:[#allocation3 + $0xa0] sm:$0xff]  ;;  %v248_v27 = vld [vmem:[#allocation3 + $0x8] sm:$0xff] }
  0x3f   : > { %s229_s20 = sadd.s32 %s768_s8, %s227_s7  ;;  %749 = vmatpush1.bf16.msra.mxu0 %v748_v13  ;;  %v736_v22 = vpack.c.bf16 %v262_v20, %v260_v19  ;;  %v419_v23 = vld [vmem:[#allocation3 + $0xb0] sm:$0xff]  ;;  %735 = vmatprep.subr.bf16.mxu1 %v734_v17  ;;  %v250_v28 = vld [vmem:[#allocation3 + $0x18] sm:$0xff]  ;;  %v499_v29 = vld [vmem:[#allocation3 + $0xc8] sm:$0xff]  ;;  %s221_s7 = sand.u32 1, %s956_s13  }
  0x40   : > { %s718_s21 = sshll.u32 %s229_s20, 3  ;;  %s237_s24 = sadd.s32 %s719_s11, %s235_s4  ;;  %751 = vmatprep.subr.bf16.mxu0 %v750_v18  ;;  %v752_v26 = vpack.c.bf16 %v419_v23, %v417_v21  ;;  %v738_v30 = vpack.c.bf16 %v250_v28, %v248_v27  ;;  %v501_v31 = vld [vmem:[#allocation3 + $0xd8] sm:$0xff]  ;;  %v247_v32 = vld [vmem:[#allocation3] sm:$0xff]  ;;  %v249_v33 = vld [vmem:[#allocation3 + $0x10] sm:$0xff] }
  0x41   : > { %s720_s25 = sshll.u32 %s237_s24, 2  ;;  %s231_s6 = scalar_lea.vmem %s1197_s0, %s718_s21  ;;  %v754_v34 = vpack.c.bf16 %v501_v31, %v499_v29  ;;  %v498_v35 = vld [vmem:[#allocation3 + $0xc0] sm:$0xff]  ;;  %v500_v36 = vld [vmem:[#allocation3 + $0xd0] sm:$0xff]  ;;  %v252_v37 = vld [vmem:[#allocation3 + $0x28] sm:$0xff]  ;;  %v740_v41 = vpack.c.bf16 %v249_v33, %v247_v32 }
  0x42   : > { %s239_s30 = scalar_lea.vmem %s1198_s1, %s720_s25  ;;  %v240_v24 = vld [vmem:[%s231_s6] sm:$0xff]  ;;  %737 = vmatpush1.bf16.msra.mxu1 %v736_v22  ;;  %v254_v38 = vld [vmem:[#allocation3 + $0x38] sm:$0xff]  ;;  %v503_v39 = vld [vmem:[#allocation3 + $0xe8] sm:$0xff]  ;;  %v756_v42 = vpack.c.bf16 %v500_v36, %v498_v35  ;;  %s717_s8 = sshll.u32 %s221_s7, 3 }
  0x43   : > { %v243_v25 = vld [vmem:[%s239_s30] sm:$0x7]  ;;  %242 = vst.msk [vmem:[#allocation2] sm:$0xff] %vm241_vm0, %v240_v24  ;;  %753 = vmatpush1.bf16.msra.mxu0 %v752_v26  ;;  %739 = vmatprep.subr.bf16.mxu1 %v738_v30  ;;  %v505_v40 = vld [vmem:[#allocation3 + $0xf8] sm:$0xff]  ;;  %v251_v43 = vld [vmem:[#allocation3 + $0x20] sm:$0xff]  ;;  %v742_v44 = vpack.c.bf16 %v254_v38, %v252_v37  ;;  %s726_s11 = sshll.u32 %s968_s16, 1 }
  0x44   : > { %245 = vst.msk [vmem:[#allocation2 + $0x8] sm:$0x7] %vm244_vm1, %v243_v25  ;;  %755 = vmatprep.subr.bf16.mxu0 %v754_v34  ;;  %v758_v45 = vpack.c.bf16 %v505_v40, %v503_v39  ;;  %v253_v46 = vld [vmem:[#allocation3 + $0x30] sm:$0xff]  ;;  %v502_v47 = vld [vmem:[#allocation3 + $0xe0] sm:$0xff]  ;;  %s598_s4 = sadd.s32 %s964_s15, %s726_s11  ;;  %s223_s21 = scalar_lea.vmem [#allocation6], %s717_s8 }
  0x45   : > { %v504_v48 = vld [vmem:[#allocation3 + $0xf0] sm:$0xff]  ;;  %v744_v51 = vpack.c.bf16 %v253_v46, %v251_v43  ;;  %s727_s20 = sshll.u32 %s598_s4, 7  ;;  %s602_s24 = sshll.u32 %s223_s21, 4  ;;  %s1146_s24 = int_to_ptr.vmem [resolvable:$true] %s602_s24 }
  0x46   : > { %v760_v52 = vpack.c.bf16 %v504_v48, %v502_v47  ;;  %s1144_s29 = scalar_lea.hbm %s1200_s3, %s727_s20  ;;  %s587_s15 = scalar_lea.sflag [#allocation5], %s221_s7 }
  0x47   : > { %s882_s16 = scalar_lea.vmem %s1146_s24, 128  ;;  %p1212_p0 = scmp.ne.s32.totalorder %s1205_s26, 0 }
  0x48   : > { %p883_p12 = scmp.ne.s32.totalorder %s1146_s24, %s882_s16  ;;  %s986_s6 = smov [#allocation6]  }
  0x49   : > { %s886_s9 = sshll.u32 %s986_s6, 4  ;;  %s887_s9 = int_to_ptr.vmem [resolvable:$false] %s886_s9 }
  0x4a   : > { %v246_v53 = vld [vmem:[#allocation2] sm:$0xff]  ;;  %p884_p2 = pnand %p883_p12, %p1212_p0  ;;  %s888_s10 = scalar_lea.vmem %s887_s9, 256 }
  0x4b   : > { %v255_v49 = vld [vmem:[#allocation2 + $0x1] sm:$0xff]  ;;  %p889_p6 = scmp.lt.s32.totalorder %s1146_s24, %s887_s9  ;;  %p890_p7 = scmp.lt.s32.totalorder %s888_s10, %s882_s16 }
  0x4c   : > { %v412_v50 = vld [vmem:[#allocation2 + $0x2] sm:$0xff]  ;;  %721 = vmatmul.mubr.msk.f32.vlgmr.msra.gmra.mrb[0].mxu1 %vm241_vm0, %v255_v49  ;;  %p885_p5 = pneg %p884_p2 }
  0x4d   : > { %723 = vmatmul.mubr.msk.f32.vlgmr.msra.gmra.mrb[0].mxu0 %vm241_vm0, %v412_v50  ;;  %741 = vmatpush1.bf16.msra.mxu1 %v740_v41  ;;  %v497_v54 = vld [vmem:[#allocation2 + $0x3] sm:$0xff]  ;;  %p891_p9 = por %p890_p7, %p889_p6 }
  0x4e   : > { %757 = vmatpush1.bf16.msra.mxu0 %v756_v42  ;;  %743 = vmatprep.subr.bf16.mxu1 %v742_v44 }
  0x4f   : > { %759 = vmatprep.subr.bf16.mxu0 %v758_v45  ;;  %405 = vmatprep.mubr.f32.mxu1 %v985_v0  ;;  %p892_p11 = pnand %p891_p9, %p885_p5 }
  0x50   : > { %573 = vmatprep.mubr.f32.mxu0 %v985_v0 }
  0x51   : > { %745 = vmatpush1.bf16.msra.mxu1 %v744_v51 }
  0x52   : > { %761 = vmatpush1.bf16.msra.mxu0 %v760_v52 }
  0x54   : > { %722 = vmatmul.mubr.msk.f32.vlgmr.msra.gmra.mrb[0].mxu1 %vm241_vm0, %v246_v53 }
  0x55   : > { %724 = vmatmul.mubr.msk.f32.vlgmr.msra.gmra.mrb[0].mxu0 %vm241_vm0, %v497_v54 }
 0x127   : > { %v407_v55 = vpop.f32.mrb[0].mxu1 }
 0x128   : > { %v575_v56 = vpop.f32.mrb[0].mxu0  ;;  %v409_v58 = vpop.f32.mrb[1].mxu1 }
 0x129   : > { %v762_v57 = vadd.f32 %v575_v56, %v407_v55  ;;  %v577_v59 = vpop.f32.mrb[1].mxu0 }
 0x12a   : > { %v763_v60 = vadd.f32 %v577_v59, %v409_v58 }
 0x12b   : > { %v582_v61 = vmul.f32 %v762_v57, %v762_v57 }
 0x12c   : > { %v583_v62 = vmul.f32 %v763_v60, %v763_v60 }
 0x12e   : > { %v584_v63 = vadd.f32 %v583_v62, %v582_v61 }
 0x130   : > { %585 = vst [vmem:[%s223_s21] sm:$0xff] %v584_v63 }
 0x131   : > { %895 = shalt.err (!%p892_p11)
}
 0x132   : > { %s896_s30 = scalar_lea.hbm %s1144_s29, 128  ;;  %s900_s11 = scalar_lea.hbm %s1200_s3, 512 }
 0x133   : > { %p897_p13 = scmp.ne.s32.totalorder %s1144_s29, %s896_s30  ;;  %p901_p3 = scmp.lt.u32.totalorder %s1144_s29, %s1200_s3 }
 0x134   : > { %p902_p8 = scmp.lt.u32.totalorder %s900_s11, %s896_s30  ;;  %p904_p12 = scmp.lt.u32.totalorder %s896_s30, %s1144_s29 }
 0x135   : > { %p898_p1 = pnand %p897_p13, %p1212_p0 }
 0x136   : > { %p903_p10 = por %p902_p8, %p901_p3 }
 0x137   : > { %p899_p4 = pneg %p898_p1 }
 0x138   : > { %p905_p2 = por %p904_p12, %p903_p10 }
 0x13a   : > { %p906_p5 = pnand %p905_p2, %p899_p4 }
 0x13c   : > { %909 = shalt.err (!%p906_p5)
}
 0x13d   : > { %773 = dma.vmem_to_hbm [thread:$0]  (%p1212_p0), %s1146_s24, 128, %s1144_s29, %s587_s15  }
 0x13e PF: > { %p785_p6 = scmp.ge.s32.totalorder %s980_s19, 2  ;;  %s614_s21 = sand.u32 1, %s952_s12  }
 0x13f   : > { %p1213_p7 = scmp.ne.s32.totalorder %s1206_s27, 0  ;;  %s615_s25 = scalar_lea.sflag [#allocation5], %s614_s21 }
 0x141   : > { %p780_p9 = pnand %p785_p6, %p1213_p7 }
 0x143   : > { %947 = dma.done.wait (!%p780_p9), %s615_s25, 128  }
 0x144   : > { %949 = vsyncadd (!%p780_p9), %s615_s25, 4294967168  ;;  %s17_s19 = sadd.s32 1, %s980_s19   ;;  %s1214_s12 = smov %s956_s13 }
 0x145   : > { %p14_p11 = scmp.ge.s32.totalorder %s17_s19, 6   ;;  %s1215_s13 = smov %s960_s14 }
 0x146   : > { %s1216_s14 = smov %s1086_s5  ;;  %s1217_s15 = smov %s972_s17 }
 0x147   : > { %s1218_s16 = smov %s976_s18  ;;  %s1219_s17 = smov %s1222_s22 }
 0x148   : > { %s1220_s18 = smov %s1226_s23  ;;  %16 = sbr.rel (!%p14_p11) target bundleno = 6 (0x6), region = 75 }
 0x14f   :  { %620 = vsyncpa [#allocation4], 1 }
 0x150   :  { %622 = vsyncpa [#allocation4 + $0x1], 1 }
 0x151   :  { %623 = vsyncpa [#allocation5], 1 }
 0x152   :  { %625 = vsyncpa [#allocation5 + $0x1], 1 }

</bundles_post_ra>
